<compile_context>
chip_gen: v5e
topology: v5e:2x2
jax: 0.10.0
libtpu: 0.0.40
codegen_flags: <defaults>
</compile_context>

<pallas_src>
import functools

import jax
import jax.numpy as jnp
from jax.experimental import pallas as pl
from jax.experimental.pallas import tpu as pltpu


def _swish_kernel(x_ref, o_ref, *, compute_dtype):
    x = x_ref[...].astype(compute_dtype)
    half = jnp.asarray(0.5, compute_dtype)
    one = jnp.asarray(1.0, compute_dtype)
    # x * sigmoid(x) == 0.5 * x * (1 + tanh(0.5 * x))
    # Single EUP op (tanh); the extra mul/add ride the VALU which has slack.
    y = half * x * (one + jnp.tanh(half * x))
    o_ref[...] = y.astype(o_ref.dtype)


def _sublane_multiple(itemsize: int) -> int:
    # Native sublane tiling: (8,128) for 4-byte, (16,128) for 2-byte, (32,128) for 1-byte.
    return max(8, 32 // max(1, itemsize))


def _pick_block_rows(rows: int, cols: int, itemsize: int, block_bytes: int) -> int:
    sublane = _sublane_multiple(itemsize)
    block_rows = max(sublane, (block_bytes // (cols * itemsize)) // sublane * sublane)
    if block_rows >= rows:
        block_rows = rows
    # Megacore / 2-TC chips: for non-trivial arrays keep >= 4 grid steps so the
    # "parallel" grid axis actually shards across both TensorCores on v7x.
    total_bytes = rows * cols * itemsize
    if total_bytes >= (4 << 20):
        while pl.cdiv(rows, block_rows) < 4 and block_rows > sublane:
            block_rows = max(sublane, ((block_rows // 2) // sublane) * sublane)
    return block_rows


def swish(
    x: jnp.ndarray,
    *,
    block_bytes: int = 8 << 20,        # ~8 MiB of tile data per block
    vmem_limit_bytes: int = 48 << 20,  # in+out double-buffered (32 MiB) + headroom
    max_lane: int = 1024,
) -> jnp.ndarray:
    """Elementwise Swish / SiLU: x * sigmoid(x). Floating-point dtypes only."""
    if not jnp.issubdtype(x.dtype, jnp.floating):
        raise TypeError(f"swish expects a floating dtype, got {x.dtype}")

    orig_shape = x.shape
    orig_dtype = x.dtype
    n = x.size
    if n == 0:
        return x

    # bf16 stays bf16 end-to-end (bf16-native VPU/EUP on v6e/v7x; Mosaic widens
    # internally on v5e); f32 stays f32; other floats (f16, ...) compute in f32.
    if orig_dtype in (jnp.dtype(jnp.float32), jnp.dtype(jnp.bfloat16)):
        compute_dtype = orig_dtype
    else:
        compute_dtype = jnp.float32

    itemsize = jnp.dtype(orig_dtype).itemsize

    # Widest lane-dense column count that divides n -> no pad, no slice.
    cols = None
    for c in (max_lane, 512, 256, 128):
        if n % c == 0:
            cols = c
            break

    x_flat = x.reshape(-1)
    if cols is None:
        # Ragged element count: pad up to one lane-block multiple.
        # TODO(synk): this costs two extra HBM passes (pad copy + output slice);
        # a single-pass version needs in-kernel tail masking with a manual DMA.
        cols = max_lane
        n_pad = pl.cdiv(n, cols) * cols
        x_flat = jnp.pad(x_flat, (0, n_pad - n))
    else:
        n_pad = n

    rows = n_pad // cols
    x2d = x_flat.reshape(rows, cols)

    block_rows = _pick_block_rows(rows, cols, itemsize, block_bytes)
    grid = (pl.cdiv(rows, block_rows),)

    kernel = functools.partial(_swish_kernel, compute_dtype=compute_dtype)
    out2d = pl.pallas_call(
        kernel,
        out_shape=jax.ShapeDtypeStruct((rows, cols), orig_dtype),
        grid=grid,
        in_specs=[pl.BlockSpec((block_rows, cols), lambda i: (i, 0))],
        out_specs=pl.BlockSpec((block_rows, cols), lambda i: (i, 0)),
        compiler_params=pltpu.CompilerParams(
            dimension_semantics=("parallel",),
            vmem_limit_bytes=vmem_limit_bytes,
        ),
    )(x2d)

    if n_pad != n:
        return out2d.reshape(-1)[:n].reshape(orig_shape)
    # Contiguous reshape back to the caller's layout (free, no extra HBM pass).
    return out2d.reshape(orig_shape)


if __name__ == "__main__":
    key = jax.random.PRNGKey(0)
    # NCHW like the PyTorch module: batch=2, channels=4, spatial 16x16.
    x = jax.random.normal(key, (2, 4, 16, 16), dtype=jnp.float32)

    y = swish(x)
    jax.block_until_ready(y)

    # Reference (torch semantics): x * sigmoid(x). The tanh form is an exact
    # rewrite of the sigmoid, so the tolerance can be tight.
    y_ref = x * jax.nn.sigmoid(x)
    assert y.shape == x.shape and y.dtype == x.dtype
    assert jnp.allclose(y, y_ref, atol=1e-5, rtol=1e-5), float(jnp.max(jnp.abs(y - y_ref)))

    print("KERNEL_OK")
</pallas_src>

<mosaic_0001>
module attributes {stable_mosaic.version = 11 : i64} {
  func.func @_swish_kernel(%arg0: i32, %arg1: memref<2x1024xf32, #tpu.memory_space<vmem>>, %arg2: memref<2x1024xf32, #tpu.memory_space<vmem>>) attributes {dimension_semantics = [#tpu.dimension_semantics<parallel>], iteration_bounds = array<i64: 1>, scalar_prefetch = 0 : i64, scratch_operands = 0 : i64, tpu.core_type = #tpu.core_type<tc>, window_params = [{transform_indices = @transform_0, window_bounds = array<i64: 2, 1024>}, {transform_indices = @transform_1, window_bounds = array<i64: 2, 1024>}]} {
    %c0 = arith.constant 0 : index
    %c0_0 = arith.constant 0 : index
    %0 = vector.load %arg1[%c0, %c0_0] : memref<2x1024xf32, #tpu.memory_space<vmem>>, vector<2x1024xf32>
    %cst = arith.constant 5.000000e-01 : f32
    %1 = vector.broadcast %cst : f32 to vector<2x1024xf32>
    %2 = arith.mulf %1, %0 : vector<2x1024xf32>
    %cst_1 = arith.constant 5.000000e-01 : f32
    %3 = vector.broadcast %cst_1 : f32 to vector<2x1024xf32>
    %4 = arith.mulf %3, %0 : vector<2x1024xf32>
    %5 = math.tanh %4 : vector<2x1024xf32>
    %cst_2 = arith.constant 1.000000e+00 : f32
    %6 = vector.broadcast %cst_2 : f32 to vector<2x1024xf32>
    %7 = arith.addf %6, %5 : vector<2x1024xf32>
    %8 = arith.mulf %2, %7 : vector<2x1024xf32>
    %c0_3 = arith.constant 0 : index
    %c0_4 = arith.constant 0 : index
    %9 = vector.load %arg2[%c0_3, %c0_4] : memref<2x1024xf32, #tpu.memory_space<vmem>>, vector<2x1024xf32>
    tpu.vector_store %arg2[%c0_3, %c0_4], %8 {strides = array<i32>} : memref<2x1024xf32, #tpu.memory_space<vmem>>, vector<2x1024xf32>,
    return
  }
  func.func @transform_0(%arg0: i32) -> (i32, i32) {
    %c0_i32 = arith.constant 0 : i32
    %c0_i32_0 = arith.constant 0 : i32
    return %arg0, %c0_i32 : i32, i32
  }
  func.func @transform_1(%arg0: i32) -> (i32, i32) {
    %c0_i32 = arith.constant 0 : i32
    %c0_i32_0 = arith.constant 0 : i32
    return %arg0, %c0_i32 : i32, i32
  }
}

</mosaic_0001>

<bundles_post_ra>
// kernel: tpu_custom_call.1
= control target key start
LH: loop header
LB: loop body
LE: loop exit
PB: predicated region body
PF: predicated region fallthrough
CT: control target
= control target key end

     0   :  { %6 = vsyncpa [#allocation3], 0  ;;  %s128_s0 = inlined_call_operand.hbm [shape: f32[2,1024], index: 0, kind: input, shape index: {}]   ;;  %s129_s1 = inlined_call_operand.hbm [shape: f32[2,1024], index: 1, kind: output, shape index: {}]  }
   0x1   :  { %7 = vsyncpa [#allocation4], 0  ;;  %s13_s8 = sshll.u32 %s128_s0, 4  ;;  %s110_s9 = smov [#allocation2]   ;;  %s14_s8 = int_to_ptr.hbm [resolvable:$true] %s13_s8 }
   0x2   :  { %s15_s10 = sshll.u32 %s110_s9, 4  ;;  %s16_s10 = int_to_ptr.vmem [resolvable:$true] %s15_s10 }
   0x3   :  { %18 = dma.hbm_to_vmem [thread:$0]  %s14_s8, 256, %s16_s10, [#allocation3]  }
   0x4   :  { %106 = dma.done.wait [#allocation3], 256  }
   0x5   :  { %107 = vsyncadd [#allocation3], 4294967040  ;;  %v23_v0 = vld [vmem:[#allocation2] sm:$0xff]  ;;  %v24_v1 = vld [vmem:[#allocation2 + $0x8] sm:$0xff]  ;;  %s111_s11 = smov [#allocation5]   ;;  %s42_s14 = sshll.u32 %s129_s1, 4  ;;  %s43_s14 = int_to_ptr.hbm [resolvable:$true] %s42_s14 }
   0x6   :  { %v25_v2 = vmul.f32 0.5, %v23_v0  ;;  %v26_v3 = vmul.f32 0.5, %v24_v1  ;;  %s40_s12 = sshll.u32 %s111_s11, 4  ;;  %s41_s12 = int_to_ptr.vmem [resolvable:$true] %s40_s12 }
   0x8   :  { %54 = vtanh.f32 %v25_v2 }
   0x9   :  { %56 = vtanh.f32 %v26_v3 }
   0xe   :  { %v55_v4 = vpop.eup %54 }
   0xf   :  { %v57_v5 = vpop.eup %56  ;;  %v29_v6 = vadd.f32 1.0, %v55_v4 }
  0x10   :  { %v30_v7 = vadd.f32 1.0, %v57_v5 }
  0x11   :  { %v31_v8 = vmul.f32 %v29_v6, %v25_v2 }
  0x12   :  { %v32_v9 = vmul.f32 %v30_v7, %v26_v3 }
  0x13   :  { %33 = vst [vmem:[#allocation5] sm:$0xff] %v31_v8 }
  0x14   :  { %34 = vst [vmem:[#allocation5 + $0x8] sm:$0xff] %v32_v9 }
  0x15   :  { %45 = dma.vmem_to_hbm [thread:$0]  %s41_s12, 256, %s43_s14, [#allocation4]  }
  0x16   :  { %108 = dma.done.wait [#allocation4], 256  }
  0x17   :  { %109 = vsyncadd [#allocation4], 4294967040 }
  0x18   :  { %50 = vsyncpa [#allocation3], 1 }
  0x19   :  { %51 = vsyncpa [#allocation4], 1 }

</bundles_post_ra>
